<compile_context>
chip_gen: v6e
topology: v6e:2x2x1
jax: 0.10.0
libtpu: 0.0.40
codegen_flags: <defaults>
</compile_context>

<pallas_src>
import math
import functools

import jax
import jax.numpy as jnp
from jax import lax
from jax.experimental import pallas as pl
from jax.experimental.pallas import tpu as pltpu

PAD_IDX = 0
TOKENS_PER_STEP = 512          # production default; shrunk automatically for tiny inputs
UNROLL = 8                     # static per-iteration unroll (tokens) inside the fori_loop
VMEM_TABLE_BUDGET = 24 << 20   # conservative resident-table budget (v7x has 64 MiB VMEM)


# ----------------------------------------------------------------------------- kernel

def token_embedding_kernel(ids_ref, table_ref, out_ref, *,
                           tokens_per_step, unroll, scale):
    """Gather `tokens_per_step` table rows into the output tile, scaled by sqrt(E).

    ids_ref   : SMEM (n_total,) int32          -- scalar-prefetched token ids
    table_ref : VMEM (V, E) float              -- full table, resident across the grid
    out_ref   : VMEM (tokens_per_step, E)      -- output tile for this grid step
    """
    base = pl.program_id(0) * tokens_per_step

    def body(r, carry):
        r0 = pl.multiple_of(r * unroll, unroll)
        for j in range(unroll):                       # static unroll: LLO sees all rows
            tok = ids_ref[base + r0 + j]              # SMEM scalar read
            row = table_ref[pl.ds(tok, 1), :]         # on-chip (1, E) gather from VMEM
            out_ref[pl.ds(r0 + j, 1), :] = row * scale   # fused *sqrt(E), direct store
        return carry

    lax.fori_loop(0, tokens_per_step // unroll, body, 0)


# ----------------------------------------------------------------------------- wrapper

def token_embedding(tokens, emb_table, tokens_per_step=None):
    """tokens: (B, S) int, emb_table: (V, E) float  ->  (B, S, E) float."""
    B, S = tokens.shape
    V, E = emb_table.shape
    N = B * S
    scale = math.sqrt(E)

    table_bytes = V * E * emb_table.dtype.itemsize
    if table_bytes > VMEM_TABLE_BUDGET:
        # TODO(synk): HBM-resident table + pipelined manual row DMAs for huge vocabs.
        raise NotImplementedError("embedding table too large for the VMEM-resident path")

    if tokens_per_step is None:
        # Large tiles amortize per-step overhead; keep >= 2 steps so both v7x TCs work.
        tokens_per_step = min(
            TOKENS_PER_STEP,
            max(UNROLL, UNROLL * pl.cdiv(pl.cdiv(N, 2), UNROLL)),
        )
    assert tokens_per_step % UNROLL == 0

    # Clamp ids so a bad token id can never drive an out-of-bounds gather.
    ids = jnp.clip(tokens.reshape(N).astype(jnp.int32), 0, V - 1)
    n_pad = (-N) % tokens_per_step
    if n_pad:
        ids = jnp.concatenate([ids, jnp.full((n_pad,), PAD_IDX, jnp.int32)])
    n_total = N + n_pad
    num_blocks = n_total // tokens_per_step

    grid_spec = pltpu.PrefetchScalarGridSpec(
        num_scalar_prefetch=1,
        grid=(num_blocks,),
        in_specs=[
            # Full table, constant block index -> DMA'd into VMEM once, revisited.
            pl.BlockSpec((V, E), lambda i, ids_ref: (0, 0)),
        ],
        out_specs=pl.BlockSpec((tokens_per_step, E), lambda i, ids_ref: (i, 0)),
    )

    cost = pl.CostEstimate(
        flops=n_total * E,
        transcendentals=0,
        bytes_accessed=(table_bytes
                        + n_total * 4
                        + n_total * E * emb_table.dtype.itemsize),
    )

    out = pl.pallas_call(
        functools.partial(
            token_embedding_kernel,
            tokens_per_step=tokens_per_step,
            unroll=UNROLL,
            scale=scale,
        ),
        grid_spec=grid_spec,
        out_shape=jax.ShapeDtypeStruct((n_total, E), emb_table.dtype),
        compiler_params=pltpu.CompilerParams(dimension_semantics=("parallel",)),
        cost_estimate=cost,
    )(ids, emb_table)

    return out[:N].reshape(B, S, E)


# ----------------------------------------------------------------------------- main

if __name__ == "__main__":
    B, S = 2, 8
    VOCAB, EMB = 50, 32

    key = jax.random.PRNGKey(0)
    kt, ke = jax.random.split(key)

    # nn.Embedding(vocab, emb, padding_idx=PAD_IDX): random table, padding row zeroed.
    emb_table = jax.random.uniform(ke, (VOCAB, EMB), jnp.float32, -0.1, 0.1)
    emb_table = emb_table.at[PAD_IDX].set(0.0)

    tokens = jax.random.randint(kt, (B, S), 1, VOCAB, dtype=jnp.int32)
    tokens = tokens.at[1, -2:].set(PAD_IDX)      # include some real padding tokens

    out = jax.block_until_ready(token_embedding(tokens, emb_table))

    # reference: plain-JAX equivalent of the PyTorch forward
    ref = emb_table[tokens] * math.sqrt(EMB)

    assert out.shape == (B, S, EMB), out.shape
    assert bool(jnp.all(jnp.isfinite(out)))
    assert bool(jnp.allclose(out, ref, atol=1e-6, rtol=1e-6))
    print("KERNEL_OK")
</pallas_src>

<mosaic_0001>
module attributes {stable_mosaic.version = 11 : i64} {
  func.func @token_embedding_kernel(%arg0: i32, %arg1: memref<16xi32, #tpu.memory_space<smem>>, %arg2: memref<50x32xf32, #tpu.memory_space<vmem>>, %arg3: memref<8x32xf32, #tpu.memory_space<vmem>>) attributes {dimension_semantics = [#tpu.dimension_semantics<parallel>], iteration_bounds = array<i64: 2>, scalar_prefetch = 1 : i64, scratch_operands = 0 : i64, tpu.core_type = #tpu.core_type<tc>, window_params = [{pipeline_mode = #tpu.pipeline_mode<synchronous>, transform_indices = @transform_0, window_bounds = array<i64: 50, 32>}, {transform_indices = @transform_1, window_bounds = array<i64: 8, 32>}]} {
    %c8_i32 = arith.constant 8 : i32
    %0 = arith.muli %arg0, %c8_i32 : i32
    %c0_i32 = arith.constant 0 : i32
    %c8_i32_0 = arith.constant 8 : i32
    %1 = arith.muli %c0_i32, %c8_i32_0 : i32
    %2 = tpu.assume_multiple %1, 8 : i32
    %3 = arith.addi %0, %2 : i32
    %c0_i32_1 = arith.constant 0 : i32
    %4 = arith.addi %3, %c0_i32_1 : i32
    %5 = arith.index_cast %4 : i32 to index
    %6 = memref.load %arg1[%5] : memref<16xi32, #tpu.memory_space<smem>>
    %7 = arith.index_cast %6 : i32 to index
    %c0 = arith.constant 0 : index
    %8 = vector.load %arg2[%7, %c0] : memref<50x32xf32, #tpu.memory_space<vmem>>, vector<1x32xf32>
    %cst = arith.constant 5.65685415 : f32
    %9 = vector.broadcast %cst : f32 to vector<1x32xf32>
    %10 = arith.mulf %8, %9 : vector<1x32xf32>
    %c0_i32_2 = arith.constant 0 : i32
    %11 = arith.addi %2, %c0_i32_2 : i32
    %12 = arith.index_cast %11 : i32 to index
    %c0_3 = arith.constant 0 : index
    %13 = vector.load %arg3[%12, %c0_3] : memref<8x32xf32, #tpu.memory_space<vmem>>, vector<1x32xf32>
    tpu.vector_store %arg3[%12, %c0_3], %10 {strides = array<i32>} : memref<8x32xf32, #tpu.memory_space<vmem>>, vector<1x32xf32>,
    %14 = arith.addi %0, %2 : i32
    %c1_i32 = arith.constant 1 : i32
    %15 = arith.addi %14, %c1_i32 : i32
    %16 = arith.index_cast %15 : i32 to index
    %17 = memref.load %arg1[%16] : memref<16xi32, #tpu.memory_space<smem>>
    %18 = arith.index_cast %17 : i32 to index
    %c0_4 = arith.constant 0 : index
    %19 = vector.load %arg2[%18, %c0_4] : memref<50x32xf32, #tpu.memory_space<vmem>>, vector<1x32xf32>
    %cst_5 = arith.constant 5.65685415 : f32
    %20 = vector.broadcast %cst_5 : f32 to vector<1x32xf32>
    %21 = arith.mulf %19, %20 : vector<1x32xf32>
    %c1_i32_6 = arith.constant 1 : i32
    %22 = arith.addi %2, %c1_i32_6 : i32
    %23 = arith.index_cast %22 : i32 to index
    %c0_7 = arith.constant 0 : index
    %24 = vector.load %arg3[%23, %c0_7] : memref<8x32xf32, #tpu.memory_space<vmem>>, vector<1x32xf32>
    tpu.vector_store %arg3[%23, %c0_7], %21 {strides = array<i32>} : memref<8x32xf32, #tpu.memory_space<vmem>>, vector<1x32xf32>,
    %25 = arith.addi %0, %2 : i32
    %c2_i32 = arith.constant 2 : i32
    %26 = arith.addi %25, %c2_i32 : i32
    %27 = arith.index_cast %26 : i32 to index
    %28 = memref.load %arg1[%27] : memref<16xi32, #tpu.memory_space<smem>>
    %29 = arith.index_cast %28 : i32 to index
    %c0_8 = arith.constant 0 : index
    %30 = vector.load %arg2[%29, %c0_8] : memref<50x32xf32, #tpu.memory_space<vmem>>, vector<1x32xf32>
    %cst_9 = arith.constant 5.65685415 : f32
    %31 = vector.broadcast %cst_9 : f32 to vector<1x32xf32>
    %32 = arith.mulf %30, %31 : vector<1x32xf32>
    %c2_i32_10 = arith.constant 2 : i32
    %33 = arith.addi %2, %c2_i32_10 : i32
    %34 = arith.index_cast %33 : i32 to index
    %c0_11 = arith.constant 0 : index
    %35 = vector.load %arg3[%34, %c0_11] : memref<8x32xf32, #tpu.memory_space<vmem>>, vector<1x32xf32>
    tpu.vector_store %arg3[%34, %c0_11], %32 {strides = array<i32>} : memref<8x32xf32, #tpu.memory_space<vmem>>, vector<1x32xf32>,
    %36 = arith.addi %0, %2 : i32
    %c3_i32 = arith.constant 3 : i32
    %37 = arith.addi %36, %c3_i32 : i32
    %38 = arith.index_cast %37 : i32 to index
    %39 = memref.load %arg1[%38] : memref<16xi32, #tpu.memory_space<smem>>
    %40 = arith.index_cast %39 : i32 to index
    %c0_12 = arith.constant 0 : index
    %41 = vector.load %arg2[%40, %c0_12] : memref<50x32xf32, #tpu.memory_space<vmem>>, vector<1x32xf32>
    %cst_13 = arith.constant 5.65685415 : f32
    %42 = vector.broadcast %cst_13 : f32 to vector<1x32xf32>
    %43 = arith.mulf %41, %42 : vector<1x32xf32>
    %c3_i32_14 = arith.constant 3 : i32
    %44 = arith.addi %2, %c3_i32_14 : i32
    %45 = arith.index_cast %44 : i32 to index
    %c0_15 = arith.constant 0 : index
    %46 = vector.load %arg3[%45, %c0_15] : memref<8x32xf32, #tpu.memory_space<vmem>>, vector<1x32xf32>
    tpu.vector_store %arg3[%45, %c0_15], %43 {strides = array<i32>} : memref<8x32xf32, #tpu.memory_space<vmem>>, vector<1x32xf32>,
    %47 = arith.addi %0, %2 : i32
    %c4_i32 = arith.constant 4 : i32
    %48 = arith.addi %47, %c4_i32 : i32
    %49 = arith.index_cast %48 : i32 to index
    %50 = memref.load %arg1[%49] : memref<16xi32, #tpu.memory_space<smem>>
    %51 = arith.index_cast %50 : i32 to index
    %c0_16 = arith.constant 0 : index
    %52 = vector.load %arg2[%51, %c0_16] : memref<50x32xf32, #tpu.memory_space<vmem>>, vector<1x32xf32>
    %cst_17 = arith.constant 5.65685415 : f32
    %53 = vector.broadcast %cst_17 : f32 to vector<1x32xf32>
    %54 = arith.mulf %52, %53 : vector<1x32xf32>
    %c4_i32_18 = arith.constant 4 : i32
    %55 = arith.addi %2, %c4_i32_18 : i32
    %56 = arith.index_cast %55 : i32 to index
    %c0_19 = arith.constant 0 : index
    %57 = vector.load %arg3[%56, %c0_19] : memref<8x32xf32, #tpu.memory_space<vmem>>, vector<1x32xf32>
    tpu.vector_store %arg3[%56, %c0_19], %54 {strides = array<i32>} : memref<8x32xf32, #tpu.memory_space<vmem>>, vector<1x32xf32>,
    %58 = arith.addi %0, %2 : i32
    %c5_i32 = arith.constant 5 : i32
    %59 = arith.addi %58, %c5_i32 : i32
    %60 = arith.index_cast %59 : i32 to index
    %61 = memref.load %arg1[%60] : memref<16xi32, #tpu.memory_space<smem>>
    %62 = arith.index_cast %61 : i32 to index
    %c0_20 = arith.constant 0 : index
    %63 = vector.load %arg2[%62, %c0_20] : memref<50x32xf32, #tpu.memory_space<vmem>>, vector<1x32xf32>
    %cst_21 = arith.constant 5.65685415 : f32
    %64 = vector.broadcast %cst_21 : f32 to vector<1x32xf32>
    %65 = arith.mulf %63, %64 : vector<1x32xf32>
    %c5_i32_22 = arith.constant 5 : i32
    %66 = arith.addi %2, %c5_i32_22 : i32
    %67 = arith.index_cast %66 : i32 to index
    %c0_23 = arith.constant 0 : index
    %68 = vector.load %arg3[%67, %c0_23] : memref<8x32xf32, #tpu.memory_space<vmem>>, vector<1x32xf32>
    tpu.vector_store %arg3[%67, %c0_23], %65 {strides = array<i32>} : memref<8x32xf32, #tpu.memory_space<vmem>>, vector<1x32xf32>,
    %69 = arith.addi %0, %2 : i32
    %c6_i32 = arith.constant 6 : i32
    %70 = arith.addi %69, %c6_i32 : i32
    %71 = arith.index_cast %70 : i32 to index
    %72 = memref.load %arg1[%71] : memref<16xi32, #tpu.memory_space<smem>>
    %73 = arith.index_cast %72 : i32 to index
    %c0_24 = arith.constant 0 : index
    %74 = vector.load %arg2[%73, %c0_24] : memref<50x32xf32, #tpu.memory_space<vmem>>, vector<1x32xf32>
    %cst_25 = arith.constant 5.65685415 : f32
    %75 = vector.broadcast %cst_25 : f32 to vector<1x32xf32>
    %76 = arith.mulf %74, %75 : vector<1x32xf32>
    %c6_i32_26 = arith.constant 6 : i32
    %77 = arith.addi %2, %c6_i32_26 : i32
    %78 = arith.index_cast %77 : i32 to index
    %c0_27 = arith.constant 0 : index
    %79 = vector.load %arg3[%78, %c0_27] : memref<8x32xf32, #tpu.memory_space<vmem>>, vector<1x32xf32>
    tpu.vector_store %arg3[%78, %c0_27], %76 {strides = array<i32>} : memref<8x32xf32, #tpu.memory_space<vmem>>, vector<1x32xf32>,
    %80 = arith.addi %0, %2 : i32
    %c7_i32 = arith.constant 7 : i32
    %81 = arith.addi %80, %c7_i32 : i32
    %82 = arith.index_cast %81 : i32 to index
    %83 = memref.load %arg1[%82] : memref<16xi32, #tpu.memory_space<smem>>
    %84 = arith.index_cast %83 : i32 to index
    %c0_28 = arith.constant 0 : index
    %85 = vector.load %arg2[%84, %c0_28] : memref<50x32xf32, #tpu.memory_space<vmem>>, vector<1x32xf32>
    %cst_29 = arith.constant 5.65685415 : f32
    %86 = vector.broadcast %cst_29 : f32 to vector<1x32xf32>
    %87 = arith.mulf %85, %86 : vector<1x32xf32>
    %c7_i32_30 = arith.constant 7 : i32
    %88 = arith.addi %2, %c7_i32_30 : i32
    %89 = arith.index_cast %88 : i32 to index
    %c0_31 = arith.constant 0 : index
    %90 = vector.load %arg3[%89, %c0_31] : memref<8x32xf32, #tpu.memory_space<vmem>>, vector<1x32xf32>
    tpu.vector_store %arg3[%89, %c0_31], %87 {strides = array<i32>} : memref<8x32xf32, #tpu.memory_space<vmem>>, vector<1x32xf32>,
    %c1_i32_32 = arith.constant 1 : i32
    return
  }
  func.func @transform_0(%arg0: i32, %arg1: memref<16xi32, #tpu.memory_space<smem>>) -> (i32, i32) {
    %c0_i32 = arith.constant 0 : i32
    %c0_i32_0 = arith.constant 0 : i32
    %c0_i32_1 = arith.constant 0 : i32
    return %c0_i32, %c0_i32_0 : i32, i32
  }
  func.func @transform_1(%arg0: i32, %arg1: memref<16xi32, #tpu.memory_space<smem>>) -> (i32, i32) {
    %c0_i32 = arith.constant 0 : i32
    %c0_i32_0 = arith.constant 0 : i32
    return %arg0, %c0_i32 : i32, i32
  }
}

</mosaic_0001>

<bundles_post_ra>
// kernel: tpu_custom_call.1
= control target key start
LH: loop header
LB: loop body
LE: loop exit
PB: predicated region body
PF: predicated region fallthrough
CT: control target
= control target key end

     0   :  { %s530_s0 = inlined_call_operand.vmem [shape: s32[16], index: 0, kind: input, shape index: {}]   ;;  %s531_s1 = inlined_call_operand.vmem [shape: f32[50,32], index: 1, kind: input, shape index: {}]   ;;  %s532_s2 = inlined_call_operand.hbm [shape: f32[16,32], index: 2, kind: output, shape index: {}]  }
   0x1   :  { %s7_s11 = sshll.u32 %s530_s0, 4  ;;  %s8_s11 = int_to_ptr.vmem [resolvable:$true] %s7_s11 }
   0x2   :  { %s298_s12 = scalar_lea.vmem %s8_s11, 16  ;;  %p303_p1 = scmp.lt.s32.totalorder %s8_s11, %s8_s11 }
   0x3   :  { %p299_p0 = scmp.ne.s32.totalorder %s8_s11, %s298_s12  ;;  %p304_p2 = scmp.lt.s32.totalorder %s298_s12, %s298_s12 }
   0x5   :  { %p305_p3 = por %p304_p2, %p303_p1 }
   0x7   :  { %p306_p4 = pnand %p305_p3, %p299_p0 }
   0x9   :  { %309 = shalt.err (!%p306_p4)  }
   0xa   :  { %s374_s13 = smov [#allocation3]  }
   0xb   :  { %10 = dma.vmem_to_smem %s8_s11, 16, %s374_s13, [#allocation2] }
   0xc   :  { %352 = dma.done.wait [#allocation2], 16 }
   0xd   :  { %353 = vsyncadd [#allocation2], 4294967280 }
   0xe   :  { %12 = sfence }
   0xf   :  { %13 = vsyncpa [#allocation5], 0 }
  0x10   :  { %15 = vsyncpa [#allocation5 + $0x1], 0  ;;  %s394_s14 = smov 0   ;;  %s396_s15 = smov 0  }
  0x11   :  { %s398_s0 = smov 0   ;;  %s400_s16 = smov 0  }
  0x12 LB: > { %s415_s17 = sadd.s32 4294967295, %s372_s16   ;;  %s242_s18 = sadd.s32 4294967294, %s372_s16   ;;  %s372_s16 = sphi %s400_s16, %s542_s16   ;;  %s368_s0 = sphi %s398_s0, %s541_s0   ;;  %s364_s15 = sphi %s396_s15, %s540_s15   ;;  %s360_s14 = sphi %s394_s14, %s539_s14  }
  0x13   : > { %s419_s19 = sadd.s32 1, %s372_s16   ;;  %s49_s20 = sadd.s32 1, %s368_s0 }
  0x14   : > { %s46_s21 = ssub.s32 %s372_s16, %s419_s19  ;;  %p59_p5 = scmp.ne.s32.totalorder %s368_s0, %s364_s15 }
  0x15   : > { %p47_p6 = scmp.eq.s32.totalorder %s46_s21, 0  ;;  %p60_p7 = scmp.eq.s32.totalorder %s415_s17, 1 }
  0x16   : > { %p65_p8 = scmp.ne.s32.totalorder %s364_s15, %s360_s14  ;;  %p66_p9 = scmp.eq.s32.totalorder %s242_s18, 1 }
  0x17   : > { %s430_s22 = scalar_select %p47_p6, %s368_s0, %s49_s20  }
  0x18   : > { %p432_p10 = por %p60_p7, %p59_p5  ;;  %p436_p11 = por %p66_p9, %p65_p8 }
  0x19   : > { %534 = sst [smem:[#allocation8_spill]] %s430_s22  ;;  %p244_p12 = scmp.ge.s32.totalorder %s372_s16, 1 }
  0x1a   : > { %p87_p13 = scmp.lt.s32.totalorder %s372_s16, 3 }
  0x1c   : > { %p88_p0 = pnand %p244_p12, %p87_p13 }
  0x1d   : > { %s533_s25 = sand.u32 (!%p88_p0), 1, %s364_s15   ;;  %s246_s26 = sshll.u32 (!%p88_p0), %s415_s17, 3 }
  0x1e   : > { %91 = sbr.rel (%p88_p0) target bundleno = 70 (0x46), region = 24  ;;  %s245_s27 = sshll.u32 (!%p88_p0), %s533_s25, 3 }
  0x1f   : > { %s104_s28 = sld [smem:[#allocation3 + %s246_s26]] (!%p88_p0)  ;;  %s110_s29 = sadd.s32 (!%p88_p0), 1, %s246_s26 }
  0x20   : > { %s118_s30 = sadd.s32 (!%p88_p0), 2, %s246_s26  ;;  %s111_s3 = sld [smem:[#allocation3 + %s110_s29]] (!%p88_p0) }
  0x21   : > { %s126_s4 = sadd.s32 (!%p88_p0), 3, %s246_s26  ;;  %s119_s5 = sld [smem:[#allocation3 + %s118_s30]] (!%p88_p0) }
  0x22   : > { %s134_s6 = sadd.s32 (!%p88_p0), 4, %s246_s26  ;;  %s127_s7 = sld [smem:[#allocation3 + %s126_s4]] (!%p88_p0) }
  0x23   : > { %s142_s8 = sadd.s32 5, %s246_s26  ;;  %s135_s12 = sld [smem:[#allocation3 + %s134_s6]]  ;;  %vm108_vm0 = vcmask 253952  }
  0x24   : > { %s143_s13 = sld [smem:[#allocation3 + %s142_s8]]  ;;  %s150_s18 = sadd.s32 6, %s246_s26 }
  0x25   : > { %s105_s11 = scalar_lea.vmem %s531_s1, %s104_s28  ;;  %s151_s20 = sld [smem:[#allocation3 + %s150_s18]] }
  0x26   : > { %v106_v0 = vld [vmem:[%s105_s11] sm:$0x1]  ;;  %s158_s21 = sadd.s32 7, %s246_s26  ;;  %s112_s29 = scalar_lea.vmem %s531_s1, %s111_s3 }
  0x27   : > { %v107_v1 = vmul.f32 5.656854, %v106_v0  ;;  %s159_s30 = sld [smem:[#allocation3 + %s158_s21]]  ;;  %s452_s4 = scalar_lea.vmem [#allocation4], %s245_s27  ;;  %v113_v2 = vld [vmem:[%s112_s29] sm:$0x1] }
  0x28   : > { %s120_s8 = scalar_lea.vmem %s531_s1, %s119_s5  ;;  %v114_v3 = vmul.f32 5.656854, %v113_v2  ;;  %s128_s26 = scalar_lea.vmem %s531_s1, %s127_s7 }
  0x29   : > { %109 = vst.msk [vmem:[%s452_s4] sm:$0x1] %vm108_vm0, %v107_v1  ;;  %v121_v4 = vld [vmem:[%s120_s8] sm:$0x1]  ;;  %s136_s9 = scalar_lea.vmem %s531_s1, %s135_s12  ;;  %s255_s18 = sshll.u32 %s415_s17, 7 }
  0x2a   : > { %v122_v5 = vmul.f32 5.656854, %v121_v4  ;;  %v129_v6 = vld [vmem:[%s128_s26] sm:$0x1]  ;;  %247 = vst.msk [vmem:[%s452_s4 + $0x1] sm:$0x1] %vm108_vm0, %v114_v3  ;;  %s144_s11 = scalar_lea.vmem %s531_s1, %s143_s13 }
  0x2b   : > { %v130_v7 = vmul.f32 5.656854, %v129_v6  ;;  %v137_v8 = vld [vmem:[%s136_s9] sm:$0x1]  ;;  %s152_s12 = scalar_lea.vmem %s531_s1, %s151_s20  ;;  %s180_s29 = sshll.u32 %s452_s4, 4  ;;  %s181_s29 = int_to_ptr.vmem [resolvable:$true] %s180_s29 }
  0x2c   : > { %248 = vst.msk [vmem:[%s452_s4 + $0x2] sm:$0x1] %vm108_vm0, %v122_v5  ;;  %v138_v9 = vmul.f32 5.656854, %v137_v8  ;;  %v145_v10 = vld [vmem:[%s144_s11] sm:$0x1]  ;;  %s489_s20 = scalar_lea.hbm %s532_s2, %s255_s18 }
  0x2d   : > { %249 = vst.msk [vmem:[%s452_s4 + $0x3] sm:$0x1] %vm108_vm0, %v130_v7  ;;  %v146_v11 = vmul.f32 5.656854, %v145_v10  ;;  %v153_v12 = vld [vmem:[%s152_s12] sm:$0x1]  ;;  %s160_s17 = scalar_lea.vmem %s531_s1, %s159_s30 }
  0x2e   : > { %250 = vst.msk [vmem:[%s452_s4 + $0x4] sm:$0x1] %vm108_vm0, %v138_v9  ;;  %v154_v13 = vmul.f32 5.656854, %v153_v12  ;;  %v161_v14 = vld [vmem:[%s160_s17] sm:$0x1] }
  0x2f   : > { %251 = vst.msk [vmem:[%s452_s4 + $0x5] sm:$0x1] %vm108_vm0, %v146_v11  ;;  %v162_v15 = vmul.f32 5.656854, %v161_v14  ;;  %s537_s22 = sand.u32 1, %s364_s15   ;;  %s310_s30 = scalar_lea.vmem %s181_s29, 128 }
  0x30   : > { %252 = vst.msk [vmem:[%s452_s4 + $0x6] sm:$0x1] %vm108_vm0, %v154_v13  ;;  %s167_s25 = scalar_lea.sflag [#allocation5], %s537_s22  ;;  %p311_p1 = scmp.ne.s32.totalorder %s181_s29, %s310_s30 }
  0x31   : > { %253 = vst.msk [vmem:[%s452_s4 + $0x7] sm:$0x1] %vm108_vm0, %v162_v15  ;;  %s375_s26 = smov [#allocation4]  }
  0x32   : > { %p312_p2 = pnand %p311_p1, %p432_p10  ;;  %s314_s27 = sshll.u32 %s375_s26, 4  ;;  %s315_s27 = int_to_ptr.vmem [resolvable:$false] %s314_s27 }
  0x33   : > { %s316_s3 = scalar_lea.vmem %s315_s27, 256  ;;  %p317_p4 = scmp.lt.s32.totalorder %s181_s29, %s315_s27 }
  0x34   : > { %p313_p3 = pneg %p312_p2  ;;  %p318_p5 = scmp.lt.s32.totalorder %s316_s3, %s310_s30 }
  0x36   : > { %p319_p6 = por %p318_p5, %p317_p4 }
  0x38   : > { %p320_p7 = pnand %p319_p6, %p313_p3 }
  0x3a   : > { %323 = shalt.err (!%p320_p7)
}
  0x3b   : > { %s324_s4 = scalar_lea.hbm %s489_s20, 128  ;;  %s328_s10 = scalar_lea.hbm %s532_s2, 256 }
  0x3c   : > { %p325_p8 = scmp.ne.s32.totalorder %s489_s20, %s324_s4  ;;  %p329_p13 = scmp.lt.s32.totalorder %s489_s20, %s532_s2 }
  0x3d   : > { %p330_p0 = scmp.lt.s32.totalorder %s328_s10, %s324_s4 }
  0x3e   : > { %p326_p9 = pnand %p325_p8, %p432_p10 }
  0x3f   : > { %p331_p1 = por %p330_p0, %p329_p13 }
  0x40   : > { %p327_p12 = pneg %p326_p9 }
  0x42   : > { %p332_p2 = pnand %p331_p1, %p327_p12 }
  0x44   : > { %335 = shalt.err (!%p332_p2)
}
  0x45   : > { %258 = dma.vmem_to_hbm [thread:$0]  (%p432_p10), %s181_s29, 128, %s489_s20, %s167_s25  }
  0x46 PF: > { %p264_p3 = scmp.ge.s32.totalorder %s372_s16, 2  ;;  %s192_s7 = sand.u32 1, %s360_s14  }
  0x47   : > { %s193_s21 = scalar_lea.sflag [#allocation5], %s192_s7 }
  0x48   : > { %p261_p4 = pnand %p264_p3, %p436_p11 }
  0x4a   : > { %p262_p5 = pneg %p261_p4 }
  0x4c   : > { %355 = dma.done.wait (%p262_p5), %s193_s21, 128  }
  0x4d   : > { %357 = vsyncadd (%p262_p5), %s193_s21, 4294967168  ;;  %s538_s12 = sld [smem:[#allocation8_spill]]  ;;  %p18_p6 = scmp.ge.s32.totalorder %s419_s19, 4  }
  0x4e   : > { %s539_s14 = smov %s364_s15  ;;  %s540_s15 = smov %s368_s0 }
  0x4f   : > { %s542_s16 = smov %s419_s19  ;;  %20 = sbr.rel (!%p18_p6) target bundleno = 18 (0x12), region = 71 }
  0x53   : > { %s541_s0 = smov %s538_s12 }
  0x54   :  { %198 = vsyncpa [#allocation5], 1 }
  0x55   :  { %200 = vsyncpa [#allocation5 + $0x1], 1 }

</bundles_post_ra>
